<compile_context>
chip_gen: v7x
topology: tpu7x:2x2x1
jax: 0.10.0
libtpu: 0.0.40
codegen_flags: <defaults>
</compile_context>

<pallas_src>
import math
import functools

import jax
import jax.numpy as jnp
from jax import lax
from jax.experimental import pallas as pl
from jax.experimental.pallas import tpu as pltpu


def _round_up(x, m):
    return (x + m - 1) // m * m


# --------------------------------------------------------------------------
# Fast path: embedding table resident in VMEM, in-kernel dynamic-slice gather.
# --------------------------------------------------------------------------
def _resident_kernel(ids_ref, table_ref, out_ref, *, scale, tile_n, vocab):
    # ids_ref:   (n_pad,)   int32, SMEM (scalar prefetch)
    # table_ref: (V, E)     VMEM, constant index_map -> fetched once, resident
    # out_ref:   (tile_n,E) VMEM output tile
    base = pl.program_id(0) * tile_n

    def body(r, carry):
        row = ids_ref[base + r]
        row = jnp.minimum(jnp.maximum(row, 0), vocab - 1)
        v = table_ref[pl.ds(row, 1), :].astype(jnp.float32) * scale
        out_ref[pl.ds(r, 1), :] = v.astype(out_ref.dtype)
        return carry

    lax.fori_loop(0, tile_n, body, 0)


# --------------------------------------------------------------------------
# Large-table path: HBM row-gather with 2-deep scratch and next-tile prefetch.
# --------------------------------------------------------------------------
def _hbm_gather_kernel(ids_ref, table_hbm, out_ref, buf, sem, *,
                       scale, tile_n, vocab):
    # ids_ref:   (n_pad,)        int32, SMEM (scalar prefetch)
    # table_hbm: (V, E)          HBM (pl.ANY)
    # out_ref:   (tile_n, E)     VMEM output tile
    # buf:       (2, tile_n, E)  VMEM gather scratch (double buffered)
    # sem:       DMA sems, one per slot
    i = pl.program_id(0)
    n_steps = pl.num_programs(0)

    def issue(tile_idx, slot):
        base = tile_idx * tile_n

        def body(r, carry):
            row = ids_ref[base + r]
            row = jnp.minimum(jnp.maximum(row, 0), vocab - 1)
            pltpu.make_async_copy(
                table_hbm.at[pl.ds(row, 1), :],
                buf.at[slot, pl.ds(r, 1), :],
                sem.at[slot],
            ).start()
            return carry

        lax.fori_loop(0, tile_n, body, 0)

    # Prime the pipeline with tile 0 on the very first step.
    @pl.when(i == 0)
    def _():
        issue(0, 0)

    # Prefetch next tile's rows before waiting on the current tile.
    @pl.when(i + 1 < n_steps)
    def _():
        issue(i + 1, (i + 1) & 1)

    slot = i & 1
    # Single aggregate wait: all tile_n row copies signal sem[slot]; one
    # descriptor covering tile_n*E*itemsize bytes consumes the full amount.
    pltpu.make_async_copy(buf.at[slot], buf.at[slot], sem.at[slot]).wait()

    out_ref[...] = (buf[slot].astype(jnp.float32) * scale).astype(out_ref.dtype)


# --------------------------------------------------------------------------
# Single pallas_call over a (chunk of) padded, flattened token ids.
# --------------------------------------------------------------------------
def _embedding_call(ids, table, *, scale, tile_n, resident):
    (n_pad,) = ids.shape
    V, E = table.shape
    itemsize = jnp.dtype(table.dtype).itemsize
    grid = (n_pad // tile_n,)

    if resident:
        kernel = functools.partial(
            _resident_kernel, scale=scale, tile_n=tile_n, vocab=V)
        in_specs = [pl.BlockSpec((V, E), lambda i, ids: (0, 0))]  # resident
        scratch = []
        semantics = ("parallel",)
        bytes_accessed = V * E * itemsize + n_pad * E * itemsize + n_pad * 4
    else:
        kernel = functools.partial(
            _hbm_gather_kernel, scale=scale, tile_n=tile_n, vocab=V)
        in_specs = [pl.BlockSpec(memory_space=pl.ANY)]            # stays in HBM
        scratch = [
            pltpu.VMEM((2, tile_n, E), table.dtype),              # gather buf
            pltpu.SemaphoreType.DMA((2,)),                        # per-slot sem
        ]
        semantics = ("arbitrary",)  # cross-step prefetch -> not parallel
        bytes_accessed = 2 * n_pad * E * itemsize + n_pad * 4

    return pl.pallas_call(
        kernel,
        out_shape=jax.ShapeDtypeStruct((n_pad, E), table.dtype),
        grid_spec=pltpu.PrefetchScalarGridSpec(
            num_scalar_prefetch=1,                    # ids -> SMEM
            grid=grid,
            in_specs=in_specs,
            out_specs=pl.BlockSpec((tile_n, E), lambda i, ids: (i, 0)),
            scratch_shapes=scratch,
        ),
        compiler_params=pltpu.CompilerParams(dimension_semantics=semantics),
        cost_estimate=pl.CostEstimate(
            flops=n_pad * E,
            transcendentals=0,
            bytes_accessed=bytes_accessed,
        ),
    )(ids, table)


# --------------------------------------------------------------------------
# Public wrapper.
# --------------------------------------------------------------------------
def token_embedding(tokens, table, *, tile_n=None,
                    resident_table_bytes=16 * 1024 * 1024,
                    max_ids_per_call=65536):
    """tokens: int array (any shape), table: (V, E) -> tokens.shape + (E,)."""
    V, E = table.shape
    itemsize = jnp.dtype(table.dtype).itemsize
    scale = float(math.sqrt(E))
    # Sublane granularity of the (tile_n, E) output block depends on dtype.
    sublane = {4: 8, 2: 16, 1: 32}.get(itemsize, 8)

    lead_shape = tokens.shape
    N = int(math.prod(lead_shape)) if lead_shape else 1
    ids = tokens.reshape(-1).astype(jnp.int32)

    table_bytes = V * E * itemsize
    resident = table_bytes <= resident_table_bytes

    # Conservative per-call VMEM budget for kernel buffers (safe on v7x's
    # 64 MiB VMEM / 32 MiB default scoped limit as well as v5e/v6e).
    vmem_budget = 24 * 1024 * 1024
    if tile_n is None:
        if resident:
            avail = max(vmem_budget - table_bytes, 2 * sublane * E * itemsize)
            tile_max = avail // (2 * E * itemsize)        # 2 out buffers
        else:
            tile_max = vmem_budget // (4 * E * itemsize)  # 2 gather + 2 out
        tile_max = max(sublane, (tile_max // sublane) * sublane)
        tile_n = min(1024, tile_max, _round_up(N, sublane))
    tile_n = max(sublane, (int(tile_n) // sublane) * sublane)

    n_pad = _round_up(N, tile_n)
    if n_pad != N:
        ids = jnp.pad(ids, (0, n_pad - N))   # padded rows gather row 0

    # Chunk very long token streams so the scalar-prefetched id array stays
    # well under SMEM capacity.
    chunk = max(tile_n, (max_ids_per_call // tile_n) * tile_n)
    outs = []
    for start in range(0, n_pad, chunk):
        stop = min(start + chunk, n_pad)
        outs.append(_embedding_call(ids[start:stop], table,
                                    scale=scale, tile_n=tile_n,
                                    resident=resident))
    out_flat = outs[0] if len(outs) == 1 else jnp.concatenate(outs, axis=0)
    return out_flat[:N].reshape(*lead_shape, E)


if __name__ == "__main__":
    key = jax.random.PRNGKey(0)
    k_tab, k_tok, k_tab2, k_tok2 = jax.random.split(key, 4)

    # --- Test 1: module-consistent small shapes (resident-table fast path).
    vocab_size, emb_size, B, S = 64, 128, 2, 8
    table = jax.random.normal(k_tab, (vocab_size, emb_size), dtype=jnp.float32)
    tokens = jax.random.randint(k_tok, (B, S), 0, vocab_size, dtype=jnp.int32)

    out = jax.block_until_ready(token_embedding(tokens, table))
    ref = table[tokens] * math.sqrt(emb_size)
    assert out.shape == (B, S, emb_size)
    assert jnp.allclose(out, ref, atol=1e-5, rtol=1e-5)

    # --- Test 2: force the HBM double-buffered gather path (multi-step grid)
    # with a still-small table, to exercise the prefetch pipeline.
    vocab2, emb2, B2, S2 = 512, 256, 4, 96
    table2 = jax.random.normal(k_tab2, (vocab2, emb2), dtype=jnp.float32)
    tokens2 = jax.random.randint(k_tok2, (B2, S2), 0, vocab2, dtype=jnp.int32)

    out2 = jax.block_until_ready(
        token_embedding(tokens2, table2, tile_n=128, resident_table_bytes=0))
    ref2 = table2[tokens2] * math.sqrt(emb2)
    assert out2.shape == (B2, S2, emb2)
    assert jnp.allclose(out2, ref2, atol=1e-5, rtol=1e-5)

    print("KERNEL_OK")
</pallas_src>

<mosaic_0001>
module attributes {stable_mosaic.version = 11 : i64} {
  func.func @_resident_kernel(%arg0: i32, %arg1: memref<16xi32, #tpu.memory_space<smem>>, %arg2: memref<64x128xf32, #tpu.memory_space<vmem>>, %arg3: memref<16x128xf32, #tpu.memory_space<vmem>>) attributes {dimension_semantics = [#tpu.dimension_semantics<parallel>], iteration_bounds = array<i64: 1>, scalar_prefetch = 1 : i64, scratch_operands = 0 : i64, tpu.core_type = #tpu.core_type<tc>, window_params = [{pipeline_mode = #tpu.pipeline_mode<synchronous>, transform_indices = @transform_0, window_bounds = array<i64: 64, 128>}, {transform_indices = @transform_1, window_bounds = array<i64: 16, 128>}]} {
    %c16_i32 = arith.constant 16 : i32
    %0 = arith.muli %arg0, %c16_i32 : i32
    %c0_i32 = arith.constant 0 : i32
    %c16_i32_0 = arith.constant 16 : i32
    %1 = arith.addi %c0_i32, %c16_i32_0 : i32
    %c1_i32 = arith.constant 1 : i32
    scf.for %arg4 = %c0_i32 to %1 step %c1_i32  : i32 {
      %2 = arith.addi %0, %arg4 : i32
      %3 = arith.index_cast %2 : i32 to index
      %4 = memref.load %arg1[%3] : memref<16xi32, #tpu.memory_space<smem>>
      %c0_i32_2 = arith.constant 0 : i32
      %5 = arith.maxsi %4, %c0_i32_2 : i32
      %c63_i32 = arith.constant 63 : i32
      %6 = arith.minsi %5, %c63_i32 : i32
      %7 = arith.index_cast %6 : i32 to index
      %c0 = arith.constant 0 : index
      %8 = vector.load %arg2[%7, %c0] : memref<64x128xf32, #tpu.memory_space<vmem>>, vector<1x128xf32>
      %cst = arith.constant 11.3137083 : f32
      %9 = vector.broadcast %cst : f32 to vector<1x128xf32>
      %10 = arith.mulf %8, %9 : vector<1x128xf32>
      %11 = arith.index_cast %arg4 : i32 to index
      %c0_3 = arith.constant 0 : index
      %12 = vector.load %arg3[%11, %c0_3] : memref<16x128xf32, #tpu.memory_space<vmem>>, vector<1x128xf32>
      tpu.vector_store %arg3[%11, %c0_3], %10 {strides = array<i32>} : memref<16x128xf32, #tpu.memory_space<vmem>>, vector<1x128xf32>,
    }
    %c16_i32_1 = arith.constant 16 : i32
    return
  }
  func.func @transform_0(%arg0: i32, %arg1: memref<16xi32, #tpu.memory_space<smem>>) -> (i32, i32) {
    %c0_i32 = arith.constant 0 : i32
    %c0_i32_0 = arith.constant 0 : i32
    %c0_i32_1 = arith.constant 0 : i32
    return %c0_i32, %c0_i32_0 : i32, i32
  }
  func.func @transform_1(%arg0: i32, %arg1: memref<16xi32, #tpu.memory_space<smem>>) -> (i32, i32) {
    %c0_i32 = arith.constant 0 : i32
    %c0_i32_0 = arith.constant 0 : i32
    return %arg0, %c0_i32 : i32, i32
  }
}

</mosaic_0001>

<bundles_post_ra>
// kernel: tpu_custom_call.1
= control target key start
LH: loop header
LB: loop body
LE: loop exit
PB: predicated region body
PF: predicated region fallthrough
CT: control target
= control target key end

     0   :  { %s220_s0 = inlined_call_operand.hbm [shape: s32[16], index: 0, kind: input, shape index: {}]   ;;  %s221_s1 = inlined_call_operand.hbm [shape: f32[64,128], index: 1, kind: input, shape index: {}]   ;;  %s222_s2 = inlined_call_operand.hbm [shape: f32[16,128], index: 2, kind: output, shape index: {}]  }
   0x1   :  { %s90_s11 = scalar_lea.hbm %s220_s0, 16 }
   0x2   :  { %p91_p0 = scmp.ne.s32.totalorder %s220_s0, %s90_s11  ;;  %p94_p1 = scmp.lt.u32.totalorder %s90_s11, %s220_s0 }
   0x4   :  { %p96_p2 = pnand %p94_p1, %p91_p0 }
   0x6   :  { %99 = shalt.err (!%p96_p2)  }
   0x7   :  { %s158_s16 = smov [#allocation3]  }
   0x8   :  { %8 = dma.hbm_to_smem %s220_s0, 16, %s158_s16, [#allocation2] }
   0x9   :  { %148 = dma.done.wait [#allocation2], 16 }
   0xa   :  { %149 = vsyncadd [#allocation2], 4294967280 }
   0xb   :  { %10 = sfence }
   0xc   :  { %11 = vsyncpa [#allocation5], 0 }
   0xd   :  { %12 = vsyncpa [#allocation6], 0  ;;  %s159_s19 = smov [#allocation4]   ;;  %s100_s23 = scalar_lea.hbm %s221_s1, 1024 }
   0xe   :  { %s18_s20 = sshll.u32 %s159_s19, 4  ;;  %p101_p3 = scmp.ne.s32.totalorder %s221_s1, %s100_s23  ;;  %s19_s20 = int_to_ptr.vmem [resolvable:$true] %s18_s20 }
   0xf   :  { %p104_p4 = scmp.lt.u32.totalorder %s100_s23, %s221_s1 }
  0x11   :  { %p106_p5 = pnand %p104_p4, %p101_p3 }
  0x13   :  { %109 = shalt.err (!%p106_p5)
}
  0x14   :  { %s110_s0 = scalar_lea.vmem %s19_s20, 1024  ;;  %p115_p7 = scmp.lt.s32.totalorder %s19_s20, %s19_s20 }
  0x15   :  { %p111_p6 = scmp.ne.s32.totalorder %s19_s20, %s110_s0  ;;  %p116_p8 = scmp.lt.s32.totalorder %s110_s0, %s110_s0 }
  0x17   :  { %p117_p9 = por %p116_p8, %p115_p7 }
  0x19   :  { %p118_p10 = pnand %p117_p9, %p111_p6 }
  0x1b   :  { %121 = shalt.err (!%p118_p10)
}
  0x1c   :  { %s160_s28 = smov 128   ;;  %s161_s29 = smov 8  }
  0x1d   :  { %24 = dma.hbm_to_vmem [thread:$0]  %s221_s1, 1024, %s19_s20, [#allocation5], %s160_s28, %s160_s28, %s161_s29  }
  0x1e   :  { %150 = dma.done.wait [#allocation5], 1024  }
  0x1f   :  { %151 = vsyncadd [#allocation5], 4294966272  ;;  %s154_s4 = smov 0  }
  0x20 LB: > { %s36_s5 = sld [smem:[#allocation3 + %s156_s4]]  ;;  %s44_s7 = scalar_lea.vmem [#allocation7], %s156_s4  ;;  %s156_s4 = sphi %s154_s4, %s34_s4  }
  0x21   : > { %s34_s4 = sadd.s32 1, %s156_s4  }
  0x22   : > { %p31_p13 = scmp.ge.s32.totalorder %s34_s4, 16  }
  0x23   :  { %s162_s1 = smov (%p31_p13), [#allocation7]  }
  0x24   :  { %s51_s8 = sshll.u32 (%p31_p13), %s162_s1, 4  ;;  %s52_s8 = int_to_ptr.vmem [resolvable:$true] %s51_s8 }
  0x25   :  { %s122_s9 = scalar_lea.vmem (%p31_p13), %s52_s8, 256  ;;  %p127_p1 = scmp.lt.s32.totalorder (%p31_p13), %s52_s8, %s52_s8 }
  0x26   : > { %p37_p11 = scmp.gt.s32.totalorder %s36_s5, 0  ;;  %p70_p12 = scmp.lt.s32.totalorder %s36_s5, 63 }
  0x27   :  { %p123_p0 = scmp.ne.s32.totalorder (%p31_p13), %s52_s8, %s122_s9  ;;  %p128_p2 = scmp.lt.s32.totalorder (%p31_p13), %s122_s9, %s122_s9 }
  0x28   : > { %s224_s5 = smov (!%p37_p11, %s36_s5), 0  ;;  %33 = sbr.rel (!%p31_p13) target bundleno = 32 (0x20), region = 37 }
  0x29   : > { %s226_s5 = smov (!%p70_p12, %s224_s5), 63  ;;  %p129_p3 = por (%p31_p13), %p128_p2, %p127_p1 }
  0x2a   : > { %s41_s6 = scalar_lea.vmem [#allocation4], %s226_s5 }
  0x2b   : > { %v42_v0 = vld [vmem:[%s41_s6] sm:$0x1]  ;;  %p130_p4 = pnand (%p31_p13), %p129_p3, %p123_p0 }
  0x2c   : > { %v43_v1 = vmul.f32 11.313708, %v42_v0 }
  0x2e   : > { %45 = vst [vmem:[%s44_s7] sm:$0x1] %v43_v1 }
  0x2f   :  { %133 = shalt.err (!%p130_p4)
}
  0x30   :  { %s134_s12 = scalar_lea.hbm %s222_s2, 256 }
  0x31   :  { %p135_p5 = scmp.ne.s32.totalorder %s222_s2, %s134_s12  ;;  %p138_p6 = scmp.lt.u32.totalorder %s134_s12, %s222_s2 }
  0x33   :  { %p140_p7 = pnand %p138_p6, %p135_p5 }
  0x35   :  { %143 = shalt.err (!%p140_p7)
}
  0x36   :  { %57 = dma.vmem_to_hbm [thread:$0]  %s52_s8, 256, %s222_s2, [#allocation6], %s160_s28, %s160_s28, %s161_s29  }
  0x37   :  { %152 = dma.done.wait [#allocation6], 256  }
  0x38   :  { %153 = vsyncadd [#allocation6], 4294967040 }
  0x39   :  { %61 = vsyncpa [#allocation5], 1 }
  0x3a   :  { %62 = vsyncpa [#allocation6], 1 }

</bundles_post_ra>
